<compile_context>
chip_gen: v7x
topology: tpu7x:2x2x1
jax: 0.10.0
libtpu: 0.0.40
codegen_flags: <defaults>
</compile_context>

<pallas_src>
import jax
import jax.numpy as jnp
from jax import lax
from jax.experimental import pallas as pl
from jax.experimental.pallas import tpu as pltpu

INPUT_DIM = 256   # module default input_dim
HIDDEN_DIM = 128  # module default hidden_dim
LN_EPS = 1e-5     # nn.LayerNorm default eps


def _adapter_kernel(scale_ref,            # SMEM (1,)   scalar
                    x_ref,                # VMEM (tm, D)
                    w1_ref, b1_ref,       # VMEM (D, H), (1, H)
                    gamma_ref, beta_ref,  # VMEM (1, H), (1, H)
                    w2_ref, b2_ref,       # VMEM (H, D), (1, D)
                    o_ref):               # VMEM (tm, D)
    x = x_ref[...].astype(jnp.float32)

    # Linear1 + ReLU   (MXU: (tm, D) @ (D, H))
    h = jnp.dot(x, w1_ref[...], preferred_element_type=jnp.float32) + b1_ref[...]
    h = jnp.maximum(h, 0.0)

    # LayerNorm over the hidden dim (row-wise; eps keeps rsqrt finite even on
    # padded tail rows, which are masked out on the partial-block store).
    mean = jnp.mean(h, axis=-1, keepdims=True)
    centered = h - mean
    var = jnp.mean(centered * centered, axis=-1, keepdims=True)
    hn = centered * lax.rsqrt(var + LN_EPS)
    hn = hn * gamma_ref[...] + beta_ref[...]

    # Linear2   (MXU: (tm, H) @ (H, D))
    y = jnp.dot(hn, w2_ref[...], preferred_element_type=jnp.float32) + b2_ref[...]

    # Scaled residual
    o_ref[...] = (x + scale_ref[0] * y).astype(o_ref.dtype)


def _round_up(a, b):
    return ((a + b - 1) // b) * b


def mmseg_adapter(x, params, *, tile_m=512):
    """x: (..., input_dim) float32. Returns same shape/dtype."""
    orig_shape = x.shape
    d = orig_shape[-1]
    h = params["w1"].shape[1]
    assert d == params["w1"].shape[0]

    n = 1
    for s in orig_shape[:-1]:
        n *= s
    x2 = x.reshape(n, d)

    # Large tiles for HBM-bound efficiency, clamped for tiny inputs.  Keep a
    # multiple of 8 (sublane constraint); Pallas pads/masks the partial tail
    # block, so no host-side jnp.pad copy is needed.
    tm = min(tile_m, _round_up(n, 8))
    tm = max(8, _round_up(tm, 8))
    grid = (pl.cdiv(n, tm),)

    # Advisory cost estimate: two matmuls dominate flops, one rsqrt per token,
    # bytes ~= x read + out write + resident weights/biases.
    cost = pl.CostEstimate(
        flops=4 * n * d * h,
        transcendentals=n,
        bytes_accessed=(2 * n * d + 2 * d * h + 3 * h + 2 * d) * 4,
    )

    out = pl.pallas_call(
        _adapter_kernel,
        out_shape=jax.ShapeDtypeStruct((n, d), x.dtype),
        grid_spec=pltpu.PrefetchScalarGridSpec(
            num_scalar_prefetch=0,
            grid=grid,
            in_specs=[
                pl.BlockSpec(memory_space=pltpu.MemorySpace.SMEM),   # scale
                pl.BlockSpec((tm, d), lambda i: (i, 0)),             # x
                pl.BlockSpec((d, h),  lambda i: (0, 0)),             # w1 (resident)
                pl.BlockSpec((1, h),  lambda i: (0, 0)),             # b1
                pl.BlockSpec((1, h),  lambda i: (0, 0)),             # gamma
                pl.BlockSpec((1, h),  lambda i: (0, 0)),             # beta
                pl.BlockSpec((h, d),  lambda i: (0, 0)),             # w2 (resident)
                pl.BlockSpec((1, d),  lambda i: (0, 0)),             # b2
            ],
            out_specs=pl.BlockSpec((tm, d), lambda i: (i, 0)),
        ),
        compiler_params=pltpu.CompilerParams(
            dimension_semantics=("parallel",)),
        cost_estimate=cost,
    )(params["scale"], x2, params["w1"], params["b1"],
      params["gamma"], params["beta"], params["w2"], params["b2"])

    return out.reshape(orig_shape)


def init_params(key, input_dim=INPUT_DIM, hidden_dim=HIDDEN_DIM):
    """Deterministic synthetic parameters matching the module's shapes.

    Linear weights are stored already-transposed as (in, out) so the kernel
    computes x @ W (equivalent to PyTorch's x @ W.T with W (out, in))."""
    k1, k2, k3, k4 = jax.random.split(key, 4)
    s1 = 1.0 / jnp.sqrt(input_dim)
    s2 = 1.0 / jnp.sqrt(hidden_dim)
    return {
        "w1": jax.random.uniform(k1, (input_dim, hidden_dim), jnp.float32, -s1, s1),
        "b1": jax.random.uniform(k2, (1, hidden_dim), jnp.float32, -s1, s1),
        "gamma": jnp.ones((1, hidden_dim), jnp.float32),   # LayerNorm weight init
        "beta": jnp.zeros((1, hidden_dim), jnp.float32),   # LayerNorm bias init
        "w2": jax.random.uniform(k3, (hidden_dim, input_dim), jnp.float32, -s2, s2),
        "b2": jax.random.uniform(k4, (1, input_dim), jnp.float32, -s2, s2),
        "scale": jnp.array([0.1], jnp.float32),            # torch.ones([]) * 0.1
    }


def _reference(x, p):
    h = x @ p["w1"] + p["b1"]
    h = jnp.maximum(h, 0.0)
    mean = jnp.mean(h, axis=-1, keepdims=True)
    var = jnp.mean((h - mean) ** 2, axis=-1, keepdims=True)
    hn = (h - mean) / jnp.sqrt(var + LN_EPS)
    hn = hn * p["gamma"] + p["beta"]
    y = hn @ p["w2"] + p["b2"]
    return x + p["scale"][0] * y


if __name__ == "__main__":
    key = jax.random.PRNGKey(0)
    kp, kx1, kx2 = jax.random.split(key, 3)

    params = init_params(kp)

    # Small input consistent with the forward: (batch=2, seq=8, input_dim=256).
    x_small = jax.random.normal(kx1, (2, 8, INPUT_DIM), jnp.float32)
    out_small = jax.block_until_ready(mmseg_adapter(x_small, params))
    ref_small = _reference(x_small, params)
    assert out_small.shape == x_small.shape and out_small.dtype == x_small.dtype
    assert jnp.allclose(out_small, ref_small, atol=1e-4, rtol=1e-4), \
        float(jnp.max(jnp.abs(out_small - ref_small)))

    # Multi-step grid + partial tail block (1200 tokens, tile_m=512 -> grid=3).
    x_big = jax.random.normal(kx2, (4, 300, INPUT_DIM), jnp.float32)
    out_big = jax.block_until_ready(mmseg_adapter(x_big, params))
    ref_big = _reference(x_big, params)
    assert out_big.shape == x_big.shape and out_big.dtype == x_big.dtype
    assert jnp.allclose(out_big, ref_big, atol=1e-4, rtol=1e-4), \
        float(jnp.max(jnp.abs(out_big - ref_big)))

    print("KERNEL_OK")
</pallas_src>

<mosaic_0001>
module attributes {stable_mosaic.version = 11 : i64} {
  func.func @_adapter_kernel(%arg0: i32, %arg1: memref<1xf32, #tpu.memory_space<smem>>, %arg2: memref<16x256xf32, #tpu.memory_space<vmem>>, %arg3: memref<256x128xf32, #tpu.memory_space<vmem>>, %arg4: memref<1x128xf32, #tpu.memory_space<vmem>>, %arg5: memref<1x128xf32, #tpu.memory_space<vmem>>, %arg6: memref<1x128xf32, #tpu.memory_space<vmem>>, %arg7: memref<128x256xf32, #tpu.memory_space<vmem>>, %arg8: memref<1x256xf32, #tpu.memory_space<vmem>>, %arg9: memref<16x256xf32, #tpu.memory_space<vmem>>) attributes {dimension_semantics = [#tpu.dimension_semantics<parallel>], iteration_bounds = array<i64: 1>, scalar_prefetch = 0 : i64, scratch_operands = 0 : i64, tpu.core_type = #tpu.core_type<tc>, window_params = [{transform_indices = @transform_0, window_bounds = array<i64: 1>}, {transform_indices = @transform_1, window_bounds = array<i64: 16, 256>}, {pipeline_mode = #tpu.pipeline_mode<synchronous>, transform_indices = @transform_2, window_bounds = array<i64: 256, 128>}, {pipeline_mode = #tpu.pipeline_mode<synchronous>, transform_indices = @transform_3, window_bounds = array<i64: 1, 128>}, {pipeline_mode = #tpu.pipeline_mode<synchronous>, transform_indices = @transform_4, window_bounds = array<i64: 1, 128>}, {pipeline_mode = #tpu.pipeline_mode<synchronous>, transform_indices = @transform_5, window_bounds = array<i64: 1, 128>}, {pipeline_mode = #tpu.pipeline_mode<synchronous>, transform_indices = @transform_6, window_bounds = array<i64: 128, 256>}, {pipeline_mode = #tpu.pipeline_mode<synchronous>, transform_indices = @transform_7, window_bounds = array<i64: 1, 256>}, {transform_indices = @transform_8, window_bounds = array<i64: 16, 256>}]} {
    %c0 = arith.constant 0 : index
    %c0_0 = arith.constant 0 : index
    %0 = vector.load %arg2[%c0, %c0_0] : memref<16x256xf32, #tpu.memory_space<vmem>>, vector<16x256xf32>
    %c0_1 = arith.constant 0 : index
    %c0_2 = arith.constant 0 : index
    %1 = vector.load %arg3[%c0_1, %c0_2] : memref<256x128xf32, #tpu.memory_space<vmem>>, vector<256x128xf32>
    %cst = arith.constant dense<0.000000e+00> : vector<16x128xf32>
    %2 = tpu.matmul %0, %1, %cst {dimension_numbers = #tpu.dot_dimension_numbers<[1], [0], [0], [1], [0, 0, 1, 1], [], []>} : vector<16x256xf32>, vector<256x128xf32>, vector<16x128xf32> -> vector<16x128xf32>
    %c0_3 = arith.constant 0 : index
    %c0_4 = arith.constant 0 : index
    %3 = vector.load %arg4[%c0_3, %c0_4] : memref<1x128xf32, #tpu.memory_space<vmem>>, vector<1x128xf32>
    %4 = vector.broadcast %3 : vector<1x128xf32> to vector<16x128xf32>
    %5 = arith.addf %2, %4 : vector<16x128xf32>
    %cst_5 = arith.constant 0.000000e+00 : f32
    %6 = vector.broadcast %cst_5 : f32 to vector<16x128xf32>
    %7 = arith.maximumf %5, %6 : vector<16x128xf32>
    %cst_6 = arith.constant dense<0.000000e+00> : vector<16xf32>
    %8 = vector.multi_reduction <add>, %7, %cst_6 [1] : vector<16x128xf32> to vector<16xf32>
    %9 = vector.shape_cast %8 : vector<16xf32> to vector<16x1xf32>
    %cst_7 = arith.constant 1.280000e+02 : f32
    %10 = vector.broadcast %cst_7 : f32 to vector<16x1xf32>
    %11 = arith.divf %9, %10 : vector<16x1xf32>
    %12 = vector.broadcast %11 : vector<16x1xf32> to vector<16x128xf32>
    %13 = arith.subf %7, %12 : vector<16x128xf32>
    %14 = arith.mulf %13, %13 : vector<16x128xf32>
    %cst_8 = arith.constant dense<0.000000e+00> : vector<16xf32>
    %15 = vector.multi_reduction <add>, %14, %cst_8 [1] : vector<16x128xf32> to vector<16xf32>
    %16 = vector.shape_cast %15 : vector<16xf32> to vector<16x1xf32>
    %cst_9 = arith.constant 1.280000e+02 : f32
    %17 = vector.broadcast %cst_9 : f32 to vector<16x1xf32>
    %18 = arith.divf %16, %17 : vector<16x1xf32>
    %cst_10 = arith.constant 9.99999974E-6 : f32
    %19 = vector.broadcast %cst_10 : f32 to vector<16x1xf32>
    %20 = arith.addf %18, %19 : vector<16x1xf32>
    %21 = math.rsqrt %20 : vector<16x1xf32>
    %22 = vector.broadcast %21 : vector<16x1xf32> to vector<16x128xf32>
    %23 = arith.mulf %13, %22 : vector<16x128xf32>
    %c0_11 = arith.constant 0 : index
    %c0_12 = arith.constant 0 : index
    %24 = vector.load %arg5[%c0_11, %c0_12] : memref<1x128xf32, #tpu.memory_space<vmem>>, vector<1x128xf32>
    %25 = vector.broadcast %24 : vector<1x128xf32> to vector<16x128xf32>
    %26 = arith.mulf %23, %25 : vector<16x128xf32>
    %c0_13 = arith.constant 0 : index
    %c0_14 = arith.constant 0 : index
    %27 = vector.load %arg6[%c0_13, %c0_14] : memref<1x128xf32, #tpu.memory_space<vmem>>, vector<1x128xf32>
    %28 = vector.broadcast %27 : vector<1x128xf32> to vector<16x128xf32>
    %29 = arith.addf %26, %28 : vector<16x128xf32>
    %c0_15 = arith.constant 0 : index
    %c0_16 = arith.constant 0 : index
    %30 = vector.load %arg7[%c0_15, %c0_16] : memref<128x256xf32, #tpu.memory_space<vmem>>, vector<128x256xf32>
    %cst_17 = arith.constant dense<0.000000e+00> : vector<16x256xf32>
    %31 = tpu.matmul %29, %30, %cst_17 {dimension_numbers = #tpu.dot_dimension_numbers<[1], [0], [0], [1], [0, 0, 1, 1], [], []>} : vector<16x128xf32>, vector<128x256xf32>, vector<16x256xf32> -> vector<16x256xf32>
    %c0_18 = arith.constant 0 : index
    %c0_19 = arith.constant 0 : index
    %32 = vector.load %arg8[%c0_18, %c0_19] : memref<1x256xf32, #tpu.memory_space<vmem>>, vector<1x256xf32>
    %33 = vector.broadcast %32 : vector<1x256xf32> to vector<16x256xf32>
    %34 = arith.addf %31, %33 : vector<16x256xf32>
    %c0_20 = arith.constant 0 : index
    %35 = memref.load %arg1[%c0_20] : memref<1xf32, #tpu.memory_space<smem>>
    %36 = vector.broadcast %35 : f32 to vector<16x256xf32>
    %37 = arith.mulf %36, %34 : vector<16x256xf32>
    %38 = arith.addf %0, %37 : vector<16x256xf32>
    %c0_21 = arith.constant 0 : index
    %c0_22 = arith.constant 0 : index
    %39 = vector.load %arg9[%c0_21, %c0_22] : memref<16x256xf32, #tpu.memory_space<vmem>>, vector<16x256xf32>
    tpu.vector_store %arg9[%c0_21, %c0_22], %38 {strides = array<i32>} : memref<16x256xf32, #tpu.memory_space<vmem>>, vector<16x256xf32>,
    return
  }
  func.func @transform_0(%arg0: i32) -> i32 {
    %c0_i32 = arith.constant 0 : i32
    %c0_i32_0 = arith.constant 0 : i32
    return %c0_i32 : i32
  }
  func.func @transform_1(%arg0: i32) -> (i32, i32) {
    %c0_i32 = arith.constant 0 : i32
    %c0_i32_0 = arith.constant 0 : i32
    return %arg0, %c0_i32 : i32, i32
  }
  func.func @transform_2(%arg0: i32) -> (i32, i32) {
    %c0_i32 = arith.constant 0 : i32
    %c0_i32_0 = arith.constant 0 : i32
    %c0_i32_1 = arith.constant 0 : i32
    return %c0_i32, %c0_i32_0 : i32, i32
  }
  func.func @transform_3(%arg0: i32) -> (i32, i32) {
    %c0_i32 = arith.constant 0 : i32
    %c0_i32_0 = arith.constant 0 : i32
    %c0_i32_1 = arith.constant 0 : i32
    return %c0_i32, %c0_i32_0 : i32, i32
  }
  func.func @transform_4(%arg0: i32) -> (i32, i32) {
    %c0_i32 = arith.constant 0 : i32
    %c0_i32_0 = arith.constant 0 : i32
    %c0_i32_1 = arith.constant 0 : i32
    return %c0_i32, %c0_i32_0 : i32, i32
  }
  func.func @transform_5(%arg0: i32) -> (i32, i32) {
    %c0_i32 = arith.constant 0 : i32
    %c0_i32_0 = arith.constant 0 : i32
    %c0_i32_1 = arith.constant 0 : i32
    return %c0_i32, %c0_i32_0 : i32, i32
  }
  func.func @transform_6(%arg0: i32) -> (i32, i32) {
    %c0_i32 = arith.constant 0 : i32
    %c0_i32_0 = arith.constant 0 : i32
    %c0_i32_1 = arith.constant 0 : i32
    return %c0_i32, %c0_i32_0 : i32, i32
  }
  func.func @transform_7(%arg0: i32) -> (i32, i32) {
    %c0_i32 = arith.constant 0 : i32
    %c0_i32_0 = arith.constant 0 : i32
    %c0_i32_1 = arith.constant 0 : i32
    return %c0_i32, %c0_i32_0 : i32, i32
  }
  func.func @transform_8(%arg0: i32) -> (i32, i32) {
    %c0_i32 = arith.constant 0 : i32
    %c0_i32_0 = arith.constant 0 : i32
    return %arg0, %c0_i32 : i32, i32
  }
}

</mosaic_0001>

<bundles_post_ra>
// kernel: tpu_custom_call.1
= control target key start
LH: loop header
LB: loop body
LE: loop exit
PB: predicated region body
PF: predicated region fallthrough
CT: control target
= control target key end

     0   :  { %14 = vsyncpa [#allocation4], 0  ;;  %s740_s0 = inlined_call_operand.<no memory space> [shape: f32[1], index: 0, kind: input, shape index: {}]   ;;  %s741_s1 = inlined_call_operand.hbm [shape: f32[16,256], index: 1, kind: input, shape index: {}]   ;;  %s742_s2 = inlined_call_operand.hbm [shape: f32[256,128], index: 2, kind: input, shape index: {}]   ;;  %s743_s3 = inlined_call_operand.vmem [shape: f32[1,128], index: 3, kind: input, shape index: {}]   ;;  %s744_s4 = inlined_call_operand.vmem [shape: f32[1,128], index: 4, kind: input, shape index: {}]   ;;  %s745_s5 = inlined_call_operand.vmem [shape: f32[1,128], index: 5, kind: input, shape index: {}]   ;;  %s746_s6 = inlined_call_operand.hbm [shape: f32[128,256], index: 6, kind: input, shape index: {}]   ;;  %s747_s7 = inlined_call_operand.vmem [shape: f32[1,256], index: 7, kind: input, shape index: {}]   ;;  %s748_s8 = inlined_call_operand.hbm [shape: f32[16,256], index: 8, kind: output, shape index: {}]  }
   0x1   :  { %15 = vsyncpa [#allocation7], 0 }
   0x2   :  { %16 = vsyncpa [#allocation5], 0  ;;  %s598_s27 = smov [#allocation6]   ;;  %s504_s9 = scalar_lea.hbm %s742_s2, 4096 }
   0x3   :  { %s36_s28 = sshll.u32 %s598_s27, 4  ;;  %p505_p0 = scmp.ne.s32.totalorder %s742_s2, %s504_s9  ;;  %s37_s28 = int_to_ptr.vmem [resolvable:$true] %s36_s28 }
   0x4   :  { %p508_p1 = scmp.lt.u32.totalorder %s504_s9, %s742_s2 }
   0x6   :  { %p510_p2 = pnand %p508_p1, %p505_p0 }
   0x8   :  { %513 = shalt.err (!%p510_p2)
}
   0x9   :  { %s514_s14 = scalar_lea.vmem %s37_s28, 4096  ;;  %p519_p4 = scmp.lt.s32.totalorder %s37_s28, %s37_s28 }
   0xa   :  { %p515_p3 = scmp.ne.s32.totalorder %s37_s28, %s514_s14  ;;  %p520_p5 = scmp.lt.s32.totalorder %s514_s14, %s514_s14 }
   0xc   :  { %p521_p6 = por %p520_p5, %p519_p4 }
   0xe   :  { %p522_p7 = pnand %p521_p6, %p515_p3 }
  0x10   :  { %525 = shalt.err (!%p522_p7)
}
  0x11   :  { %s599_s15 = smov 128   ;;  %s600_s16 = smov 8  }
  0x12   :  { %42 = dma.hbm_to_vmem [thread:$0]  %s742_s2, 4096, %s37_s28, [#allocation7], %s599_s15, %s599_s15, %s600_s16  }
  0x13   :  { %s601_s19 = smov [#allocation3]   ;;  %s526_s23 = scalar_lea.hbm %s741_s1, 512 }
  0x14   :  { %s24_s20 = sshll.u32 %s601_s19, 4  ;;  %p527_p8 = scmp.ne.s32.totalorder %s741_s1, %s526_s23  ;;  %s25_s20 = int_to_ptr.vmem [resolvable:$true] %s24_s20 }
  0x15   :  { %p530_p9 = scmp.lt.u32.totalorder %s526_s23, %s741_s1 }
  0x17   :  { %p532_p10 = pnand %p530_p9, %p527_p8 }
  0x19   :  { %535 = shalt.err (!%p532_p10)
}
  0x1a   :  { %s536_s29 = scalar_lea.vmem %s25_s20, 512  ;;  %p541_p12 = scmp.lt.s32.totalorder %s25_s20, %s25_s20 }
  0x1b   :  { %p537_p11 = scmp.ne.s32.totalorder %s25_s20, %s536_s29  ;;  %p542_p13 = scmp.lt.s32.totalorder %s536_s29, %s536_s29 }
  0x1d   :  { %p543_p0 = por %p542_p13, %p541_p12 }
  0x1f   :  { %p544_p1 = pnand %p543_p0, %p537_p11 }
  0x21   :  { %547 = shalt.err (!%p544_p1)
}
  0x22   :  { %s602_s2 = smov 256   ;;  %s603_s28 = smov 16  }
  0x23   :  { %30 = dma.hbm_to_vmem [thread:$0]  %s741_s1, 512, %s25_s20, [#allocation4], %s602_s2, %s602_s2, %s603_s28  }
  0x24   :  { %s604_s10 = smov [#allocation8]   ;;  %s548_s14 = scalar_lea.hbm %s746_s6, 4096 }
  0x25   :  { %s54_s11 = sshll.u32 %s604_s10, 4  ;;  %p549_p2 = scmp.ne.s32.totalorder %s746_s6, %s548_s14  ;;  %s55_s11 = int_to_ptr.vmem [resolvable:$true] %s54_s11 }
  0x26   :  { %p552_p3 = scmp.lt.u32.totalorder %s548_s14, %s746_s6 }
  0x28   :  { %p554_p4 = pnand %p552_p3, %p549_p2 }
  0x2a   :  { %557 = shalt.err (!%p554_p4)
}
  0x2b   :  { %s558_s19 = scalar_lea.vmem %s55_s11, 4096  ;;  %p563_p6 = scmp.lt.s32.totalorder %s55_s11, %s55_s11 }
  0x2c   :  { %p559_p5 = scmp.ne.s32.totalorder %s55_s11, %s558_s19  ;;  %p564_p7 = scmp.lt.s32.totalorder %s558_s19, %s558_s19 }
  0x2e   :  { %p565_p8 = por %p564_p7, %p563_p6 }
  0x30   :  { %p566_p9 = pnand %p565_p8, %p559_p5 }
  0x32   :  { %569 = shalt.err (!%p566_p9)
}
  0x33   :  { %60 = dma.hbm_to_vmem [thread:$0]  %s746_s6, 4096, %s55_s11, [#allocation7], %s602_s2, %s602_s2, %s603_s28  }
  0x34   :  { %592 = dma.done.wait [#allocation4], 512  }
  0x35   :  { %593 = vsyncadd [#allocation4], 4294966784 }
  0x36   :  { %594 = dma.done.wait [#allocation7], 8192  }
  0x37   :  { %595 = vsyncadd [#allocation7], 4294959104  ;;  %v92_v0 = vld [vmem:[#allocation6 + $0x80] sm:$0xff]  ;;  %v93_v1 = vld [vmem:[#allocation6 + $0x88] sm:$0xff] }
  0x38   :  { %v76_v2 = vld [vmem:[#allocation6] sm:$0xff]  ;;  %v427_v3 = vpack.c.bf16 %v93_v1, %v92_v0  ;;  %v77_v4 = vld [vmem:[#allocation6 + $0x8] sm:$0xff]  ;;  %v94_v5 = vld [vmem:[#allocation6 + $0x90] sm:$0xff] }
  0x39   :  { %v95_v6 = vld [vmem:[#allocation6 + $0x98] sm:$0xff]  ;;  %v429_v7 = vpack.c.bf16 %v77_v4, %v76_v2  ;;  %v78_v9 = vld [vmem:[#allocation6 + $0x10] sm:$0xff]  ;;  %v96_v11 = vld [vmem:[#allocation6 + $0xa0] sm:$0xff] }
  0x3a   :  { %v431_v8 = vpack.c.bf16 %v95_v6, %v94_v5  ;;  %v79_v10 = vld [vmem:[#allocation6 + $0x18] sm:$0xff]  ;;  %428 = vmatprep.subr.bf16.mxu0 %v427_v3  ;;  %v97_v12 = vld [vmem:[#allocation6 + $0xa8] sm:$0xff]  ;;  %v80_v15 = vld [vmem:[#allocation6 + $0x20] sm:$0xff] }
  0x3b   :  { %430 = vmatpush3.bf16.msra.mxu0 %v429_v7  ;;  %v433_v13 = vpack.c.bf16 %v79_v10, %v78_v9  ;;  %v435_v14 = vpack.c.bf16 %v97_v12, %v96_v11  ;;  %v81_v16 = vld [vmem:[#allocation6 + $0x28] sm:$0xff]  ;;  %v98_v17 = vld [vmem:[#allocation6 + $0xb0] sm:$0xff]  ;;  %v99_v18 = vld [vmem:[#allocation6 + $0xb8] sm:$0xff] }
  0x3c   :  { %432 = vmatprep.subr.bf16.mxu0 %v431_v8  ;;  %v437_v19 = vpack.c.bf16 %v81_v16, %v80_v15  ;;  %v439_v20 = vpack.c.bf16 %v99_v18, %v98_v17  ;;  %v82_v21 = vld [vmem:[#allocation6 + $0x30] sm:$0xff]  ;;  %v83_v22 = vld [vmem:[#allocation6 + $0x38] sm:$0xff]  ;;  %v100_v23 = vld [vmem:[#allocation6 + $0xc0] sm:$0xff] }
  0x3d   :  { %v101_v24 = vld [vmem:[#allocation6 + $0xc8] sm:$0xff]  ;;  %v441_v26 = vpack.c.bf16 %v83_v22, %v82_v21  ;;  %v84_v28 = vld [vmem:[#allocation6 + $0x40] sm:$0xff]  ;;  %v102_v30 = vld [vmem:[#allocation6 + $0xd0] sm:$0xff] }
  0x3e   :  { %v694_v25 = vld [vmem:[#allocation3 + $0x8] sm:$0xff]  ;;  %v443_v27 = vpack.c.bf16 %v101_v24, %v100_v23  ;;  %v103_v31 = vld [vmem:[#allocation6 + $0xd8] sm:$0xff]  ;;  %v86_v34 = vld [vmem:[#allocation6 + $0x50] sm:$0xff] }
  0x3f   :  { %434 = vmatpush3.bf16.msra.mxu0 %v433_v13  ;;  %179 = vmatprep.mubr.f32.mxu0 %v694_v25  ;;  %v85_v29 = vld [vmem:[#allocation6 + $0x48] sm:$0xff]  ;;  %v447_v33 = vpack.c.bf16 %v103_v31, %v102_v30  ;;  %v87_v35 = vld [vmem:[#allocation6 + $0x58] sm:$0xff]  ;;  %v104_v36 = vld [vmem:[#allocation6 + $0xe0] sm:$0xff] }
  0x40   :  { %436 = vmatprep.subr.bf16.mxu0 %v435_v14  ;;  %v445_v32 = vpack.c.bf16 %v85_v29, %v84_v28  ;;  %v105_v37 = vld [vmem:[#allocation6 + $0xe8] sm:$0xff]  ;;  %v449_v38 = vpack.c.bf16 %v87_v35, %v86_v34  ;;  %v88_v40 = vld [vmem:[#allocation6 + $0x60] sm:$0xff]  ;;  %v106_v42 = vld [vmem:[#allocation6 + $0xf0] sm:$0xff] }
  0x41   :  { %v451_v39 = vpack.c.bf16 %v105_v37, %v104_v36  ;;  %v89_v41 = vld [vmem:[#allocation6 + $0x68] sm:$0xff]  ;;  %v107_v43 = vld [vmem:[#allocation6 + $0xf8] sm:$0xff]  ;;  %v90_v46 = vld [vmem:[#allocation6 + $0x70] sm:$0xff] }
  0x42   :  { %v453_v44 = vpack.c.bf16 %v89_v41, %v88_v40  ;;  %v455_v45 = vpack.c.bf16 %v107_v43, %v106_v42  ;;  %v91_v47 = vld [vmem:[#allocation6 + $0x78] sm:$0xff]  ;;  %v697_v49 = vld [vmem:[#allocation3] sm:$0xff]  ;;  %v703_v51 = vld [vmem:[#allocation3 + $0x10] sm:$0xff] }
  0x43   :  { %438 = vmatpush3.bf16.msra.mxu0 %v437_v19  ;;  %v457_v48 = vpack.c.bf16 %v91_v47, %v90_v46  ;;  %v699_v50 = vld [vmem:[#allocation3 + $0x18] sm:$0xff]  ;;  %v386_v54 = vld [vmem:[%s743_s3] ss:$0 sm:$0xff]  ;;  %v234_v63 = vld [vmem:[#allocation8 + $0x8] sm:$0xff] }
  0x44   :  { %440 = vmatprep.subr.bf16.mxu0 %v439_v20  ;;  %v236_v0 = vld [vmem:[#allocation8 + $0x18] sm:$0xff]  ;;  %v233_v1 = vld [vmem:[#allocation8] sm:$0xff]  ;;  %v235_v3 = vld [vmem:[#allocation8 + $0x10] sm:$0xff] }
  0x45   :  { %v459_v2 = vpack.c.bf16 %v236_v0, %v234_v63  ;;  %v238_v4 = vld [vmem:[#allocation8 + $0x28] sm:$0xff]  ;;  %v240_v5 = vld [vmem:[#allocation8 + $0x38] sm:$0xff]  ;;  %v461_v6 = vpack.c.bf16 %v235_v3, %v233_v1  ;;  %v237_v8 = vld [vmem:[#allocation8 + $0x20] sm:$0xff] }
  0x46   :  { %v463_v7 = vpack.c.bf16 %v240_v5, %v238_v4  ;;  %v239_v9 = vld [vmem:[#allocation8 + $0x30] sm:$0xff]  ;;  %v242_v10 = vld [vmem:[#allocation8 + $0x48] sm:$0xff]  ;;  %v244_v11 = vld [vmem:[#allocation8 + $0x58] sm:$0xff] }
  0x47   :  { %442 = vmatpush3.bf16.msra.mxu0 %v441_v26  ;;  %460 = vmatprep.subr.bf16.mxu1 %v459_v2  ;;  %v465_v12 = vpack.c.bf16 %v239_v9, %v237_v8  ;;  %v467_v13 = vpack.c.bf16 %v244_v11, %v242_v10  ;;  %v241_v14 = vld [vmem:[#allocation8 + $0x40] sm:$0xff]  ;;  %v243_v15 = vld [vmem:[#allocation8 + $0x50] sm:$0xff]  ;;  %v246_v26 = vld [vmem:[#allocation8 + $0x68] sm:$0xff] }
  0x48   :  { %444 = vmatprep.subr.bf16.mxu0 %v443_v27  ;;  %462 = vmatpush1.bf16.msra.mxu1 %v461_v6  ;;  %v469_v16 = vpack.c.bf16 %v243_v15, %v241_v14  ;;  %v248_v27 = vld [vmem:[#allocation8 + $0x78] sm:$0xff]  ;;  %v245_v29 = vld [vmem:[#allocation8 + $0x60] sm:$0xff]  ;;  %v247_v30 = vld [vmem:[#allocation8 + $0x70] sm:$0xff] }
  0x49   :  { %464 = vmatprep.subr.bf16.mxu1 %v463_v7  ;;  %v471_v28 = vpack.c.bf16 %v248_v27, %v246_v26  ;;  %v473_v31 = vpack.c.bf16 %v247_v30, %v245_v29  ;;  %v249_v35 = vld [vmem:[#allocation8 + $0x80] sm:$0xff]  ;;  %v251_v36 = vld [vmem:[#allocation8 + $0x90] sm:$0xff] }
  0x4a   :  { %v477_v37 = vpack.c.bf16 %v251_v36, %v249_v35  ;;  %v253_v41 = vld [vmem:[#allocation8 + $0xa0] sm:$0xff]  ;;  %v255_v42 = vld [vmem:[#allocation8 + $0xb0] sm:$0xff] }
  0x4b   :  { %446 = vmatpush3.bf16.msra.mxu0 %v445_v32  ;;  %v250_v32 = vld [vmem:[#allocation8 + $0x88] sm:$0xff]  ;;  %v481_v43 = vpack.c.bf16 %v255_v42, %v253_v41  ;;  %v257_v46 = vld [vmem:[#allocation8 + $0xc0] sm:$0xff] }
  0x4c   :  { %448 = vmatprep.subr.bf16.mxu0 %v447_v33  ;;  %466 = vmatpush1.bf16.msra.mxu1 %v465_v12  ;;  %v252_v33 = vld [vmem:[#allocation8 + $0x98] sm:$0xff]  ;;  %v387_v3 = vld [vmem:[%s744_s4] ss:$0 sm:$0xff]  ;;  %v267_v12 = vlaneseq }
  0x4d   :  { %468 = vmatprep.subr.bf16.mxu1 %v467_v13  ;;  %v475_v34 = vpack.c.bf16 %v252_v33, %v250_v32  ;;  %v388_v5 = vld [vmem:[%s745_s5] ss:$0 sm:$0xff] }
  0x4e   :  { %v268_v13 = vshrl.u32 %v267_v12, 7  ;;  %v265_v15 = vld [vmem:[%s747_s7] sm:$0x3]  ;;  %s606_s7 = smov [#allocation9]  }
  0x4f   :  { %450 = vmatpush3.bf16.msra.mxu0 %v449_v38  ;;  %v254_v38 = vld [vmem:[#allocation8 + $0xa8] sm:$0xff]  ;;  %s373_s27 = sshll.u32 %s606_s7, 4  ;;  %s374_s27 = int_to_ptr.vmem [resolvable:$true] %s373_s27 }
  0x50   :  { %452 = vmatprep.subr.bf16.mxu0 %v451_v39  ;;  %470 = vmatpush1.bf16.msra.mxu1 %v469_v16  ;;  %v256_v39 = vld [vmem:[#allocation8 + $0xb8] sm:$0xff]  ;;  %v269_v14 = vsub.s32 0, %v268_v13  ;;  %v273_v16 = vsub.s32 1, %v268_v13  ;;  %p575_p11 = scmp.lt.s32.totalorder %s374_s27, %s374_s27 }
  0x51   :  { %472 = vmatprep.subr.bf16.mxu1 %v471_v28  ;;  %v479_v40 = vpack.c.bf16 %v256_v39, %v254_v38 }
  0x53   :  { %454 = vmatpush3.bf16.msra.mxu0 %v453_v44  ;;  %v258_v44 = vld [vmem:[#allocation8 + $0xc8] sm:$0xff] }
  0x54   :  { %456 = vmatprep.subr.bf16.mxu0 %v455_v45  ;;  %474 = vmatpush1.bf16.msra.mxu1 %v473_v31  ;;  %v260_v45 = vld [vmem:[#allocation8 + $0xd8] sm:$0xff] }
  0x55   :  { %476 = vmatprep.subr.bf16.mxu1 %v475_v34  ;;  %v483_v47 = vpack.c.bf16 %v260_v45, %v258_v44 }
  0x57   :  { %458 = vmatpush3.bf16.msra.mxu0 %v457_v48  ;;  %v259_v48 = vld [vmem:[#allocation8 + $0xd0] sm:$0xff] }
  0x58   :  { %478 = vmatpush1.bf16.msra.mxu1 %v477_v37 }
  0x59   :  { %480 = vmatprep.subr.bf16.mxu1 %v479_v40 }
  0x5a   :  { %180 = vmatmul.mubr.f32.vlgmr.msra.gmra.mrb[0].mxu0 %v697_v49 }
  0x5b   :  { %184 = vmatprep.mubr.f32.mxu0 %v699_v50 }
  0x5c   :  { %482 = vmatpush1.bf16.msra.mxu1 %v481_v43 }
  0x5d   :  { %484 = vmatprep.subr.bf16.mxu1 %v483_v47 }
  0x5e   :  { %185 = vmatmul.mubr.f32.gmra.mrb[2].mxu0 %v703_v51 }
 0x12d   :  { %v421_v52 = vpop.f32.mrb[0].mxu0 }
 0x12e   :  { %v422_v53 = vpop.f32.mrb[1].mxu0 }
 0x12f   :  { %v423_v55 = vadd.f32 %v422_v53, %v421_v52  ;;  %v262_v52 = vld [vmem:[#allocation8 + $0xe8] sm:$0xff]  ;;  %v264_v53 = vld [vmem:[#allocation8 + $0xf8] sm:$0xff] }
 0x131   :  { %v424_v56 = vpop.f32.mrb[2].mxu0  ;;  %v182_v57 = vadd.f32 %v423_v55, %v386_v54  ;;  %v485_v55 = vpack.c.bf16 %v259_v48, %v257_v46 }
 0x132   :  { %v425_v58 = vpop.f32.mrb[3].mxu0 }
 0x133   :  { %v426_v59 = vadd.f32 %v425_v58, %v424_v56  ;;  %v190_v60 = vmax.f32 %v182_v57, 0.0  ;;  %v487_v56 = vpack.c.bf16 %v264_v53, %v262_v52  ;;  %v261_v57 = vld [vmem:[#allocation8 + $0xe0] sm:$0xff]  ;;  %v263_v58 = vld [vmem:[#allocation8 + $0xf0] sm:$0xff]  ;;  %486 = vmatpush1.bf16.msra.mxu1 %v485_v55 }
 0x135   :  { %192 = vadd.xlane.f32.xlu0 %v190_v60  ;;  %v187_v61 = vadd.f32 %v426_v59, %v386_v54  ;;  %v605_v54 = vmov 0.0   ;;  %v489_v59 = vpack.c.bf16 %v263_v58, %v261_v57  ;;  %488 = vmatprep.subr.bf16.mxu1 %v487_v56 }
 0x136   :  { %341 = vmatprep.mubr.f32.mxu1 %v605_v54 }
 0x137   :  { %v191_v62 = vmax.f32 %v187_v61, 0.0  ;;  %490 = vmatpush1.bf16.msra.mxu1 %v489_v59 }
 0x139   :  { %194 = vadd.xlane.f32.xlu0 %v191_v62 }
 0x1c2   :  { %v193_v17 = vpop.xlane.xlu0 %192 }
 0x1c3   :  { %v197_v18 = vmul.f32 0.0078125, %v193_v17  ;;  %v270_v17 = vrot.slane %v265_v15, %v269_v14 }
 0x1c5   :  { %v199_v19 = vsub.f32 %v190_v60, %v197_v18  ;;  %v274_v18 = vrot.slane %v265_v15, %v273_v16 }
 0x1c6   :  { %v195_v20 = vpop.xlane.xlu0 %194 }
 0x1c7   :  { %v198_v21 = vmul.f32 0.0078125, %v195_v20  ;;  %v201_v22 = vmul.f32 %v199_v19, %v199_v19  ;;  %v355_v20 = vstv %s740_s0  ;;  %s570_s0 = scalar_lea.vmem %s374_s27, 512 }
 0x1c8   :  { %p571_p10 = scmp.ne.s32.totalorder %s374_s27, %s570_s0  ;;  %p576_p12 = scmp.lt.s32.totalorder %s570_s0, %s570_s0 }
 0x1c9   :  { %v200_v23 = vsub.f32 %v191_v62, %v198_v21  ;;  %203 = vadd.xlane.f32.xlu1 %v201_v22 }
 0x1ca   :  { %p577_p13 = por %p576_p12, %p575_p11 }
 0x1cb   :  { %v202_v24 = vmul.f32 %v200_v23, %v200_v23 }
 0x1cc   :  { %p578_p0 = pnand %p577_p13, %p571_p10 }
 0x1cd   :  { %205 = vadd.xlane.f32.xlu1 %v202_v24 }
 0x256   :  { %v204_v60 = vpop.xlane.xlu1 %203 }
 0x257   :  { %v207_v61 = vmul.f32 0.0078125, %v204_v60 }
 0x259   :  { %v209_v62 = vadd.f32 1e-05, %v207_v61 }
 0x25a   :  { %v206_v63 = vpop.xlane.xlu1 %205 }
 0x25b   :  { %500 = vrsqrt.f32 %v209_v62  ;;  %v208_v0 = vmul.f32 0.0078125, %v206_v63 }
 0x25d   :  { %v210_v1 = vadd.f32 1e-05, %v208_v0 }
 0x25f   :  { %502 = vrsqrt.f32 %v210_v1 }
 0x265   :  { %v501_v2 = vpop.eup %500 }
 0x266   :  { %v213_v4 = vmul.f32 %v501_v2, %v199_v19 }
 0x268   :  { %v222_v6 = vmul.f32 %v387_v3, %v213_v4 }
 0x269   :  { %v503_v7 = vpop.eup %502 }
 0x26a   :  { %v231_v8 = vadd.f32 %v388_v5, %v222_v6  ;;  %v214_v9 = vmul.f32 %v503_v7, %v200_v23 }
 0x26c   :  { %342 = vmatmul.mubr.f32.vlgmr.msra.gmra.mrb[0].mxu1 %v231_v8  ;;  %v223_v10 = vmul.f32 %v387_v3, %v214_v9 }
 0x26d   :  { %347 = vmatprep.mubr.f32.mxu1 %v605_v54 }
 0x26e   :  { %v232_v11 = vadd.f32 %v388_v5, %v223_v10 }
 0x270   :  { %348 = vmatmul.mubr.f32.gmra.mrb[2].mxu1 %v232_v11 }
 0x33f   :  { %v343_v19 = vpop.f32.mrb[0].mxu1 }
 0x340   :  { %v344_v21 = vadd.f32 %v343_v19, %v270_v17  ;;  %v345_v22 = vpop.f32.mrb[1].mxu1 }
 0x341   :  { %v346_v23 = vadd.f32 %v345_v22, %v274_v18 }
 0x342   :  { %v356_v24 = vmul.f32 %v355_v20, %v344_v21 }
 0x343   :  { %v357_v26 = vmul.f32 %v355_v20, %v346_v23  ;;  %v349_v27 = vpop.f32.mrb[2].mxu1 }
 0x344   :  { %v360_v28 = vadd.f32 %v356_v24, %v697_v49  ;;  %v350_v29 = vadd.f32 %v349_v27, %v270_v17  ;;  %v351_v30 = vpop.f32.mrb[3].mxu1 }
 0x345   :  { %v361_v31 = vadd.f32 %v357_v26, %v694_v25  ;;  %v352_v32 = vadd.f32 %v351_v30, %v274_v18 }
 0x346   :  { %364 = vst [vmem:[#allocation9] sm:$0xff] %v360_v28  ;;  %v358_v33 = vmul.f32 %v355_v20, %v350_v29 }
 0x347   :  { %365 = vst [vmem:[#allocation9 + $0x8] sm:$0xff] %v361_v31  ;;  %v359_v34 = vmul.f32 %v355_v20, %v352_v32 }
 0x348   :  { %v362_v35 = vadd.f32 %v358_v33, %v703_v51 }
 0x349   :  { %v363_v36 = vadd.f32 %v359_v34, %v699_v50 }
 0x34a   :  { %366 = vst [vmem:[#allocation9 + $0x10] sm:$0xff] %v362_v35 }
 0x34b   :  { %367 = vst [vmem:[#allocation9 + $0x18] sm:$0xff] %v363_v36 }
 0x34c   :  { %581 = shalt.err (!%p578_p0)
}
 0x34d   :  { %s582_s9 = scalar_lea.hbm %s748_s8, 512 }
 0x34e   :  { %p583_p1 = scmp.ne.s32.totalorder %s748_s8, %s582_s9  ;;  %p586_p2 = scmp.lt.u32.totalorder %s582_s9, %s748_s8 }
 0x350   :  { %p588_p3 = pnand %p586_p2, %p583_p1 }
 0x352   :  { %591 = shalt.err (!%p588_p3)
}
 0x353   :  { %379 = dma.vmem_to_hbm [thread:$0]  %s374_s27, 512, %s748_s8, [#allocation5], %s602_s2, %s602_s2, %s603_s28  }
 0x354   :  { %596 = dma.done.wait [#allocation5], 512  }
 0x355   :  { %597 = vsyncadd [#allocation5], 4294966784 }
 0x356   :  { %383 = vsyncpa [#allocation4], 1 }
 0x357   :  { %384 = vsyncpa [#allocation7], 1 }
 0x358   :  { %385 = vsyncpa [#allocation5], 1 }

</bundles_post_ra>
